<compile_context>
chip_gen: v5e
topology: v5e:2x2
jax: 0.10.0
libtpu: 0.0.40
codegen_flags: <defaults>
</compile_context>

<pallas_src>
import functools

import jax
import jax.numpy as jnp
from jax.experimental import pallas as pl
from jax.experimental.pallas import tpu as pltpu

_LANE = 128


def _round_up(v, m):
    return ((v + m - 1) // m) * m


def _ff_kernel(x_ref, wcat_ref, bcat_ref, w2_ref, b2_ref, w3_ref, b3_ref,
               o_ref, *, out_p):
    """One batch-tile of the FF forward pass, fully fused on the MXU/VPU."""
    x = x_ref[...]                                  # (bm, in)  -- native dtype

    # Fused layer-1 + shortcut: single MXU pass over x, N = 2*out_p.
    h0 = jnp.dot(x, wcat_ref[...], preferred_element_type=jnp.float32)
    h0 = h0 + bcat_ref[...].astype(jnp.float32)     # (bm, 2*out_p) f32
    h = jnp.maximum(h0[:, :out_p], 0.0)             # block layer-1 activation
    sc = h0[:, out_p:]                              # linear shortcut (no ReLU)

    # Layer 2.
    h = jnp.dot(h.astype(w2_ref.dtype), w2_ref[...],
                preferred_element_type=jnp.float32)
    h = jnp.maximum(h + b2_ref[...].astype(jnp.float32), 0.0)

    # Layer 3.
    h = jnp.dot(h.astype(w3_ref.dtype), w3_ref[...],
                preferred_element_type=jnp.float32)
    h = jnp.maximum(h + b3_ref[...].astype(jnp.float32), 0.0)

    o_ref[...] = (h + sc).astype(o_ref.dtype)


@functools.partial(jax.jit, static_argnames=("block_m", "compute_dtype"))
def ff_forward(x, params, block_m=512, compute_dtype=None):
    """x: [B, input_dim] -> [B, out_dim]."""
    w1, b1, w2, b2, w3, b3, ws, bs = params
    orig_dtype = x.dtype
    B, input_dim = x.shape
    out_dim = w1.shape[1]

    # Optional low-precision MXU path (f32 accumulation stays in the kernel).
    if compute_dtype is not None:
        x = x.astype(compute_dtype)
        w1, w2, w3, ws = (w.astype(compute_dtype) for w in (w1, w2, w3, ws))
    # Biases are added onto the f32 accumulator -> keep them f32.
    b1, b2, b3, bs = (b.astype(jnp.float32) for b in (b1, b2, b3, bs))

    # Lane-dense padding of the feature dim to a multiple of 128.
    out_p = _round_up(out_dim, _LANE)

    def pad2(a, rows, cols):
        return jnp.pad(a, ((0, rows - a.shape[0]), (0, cols - a.shape[1])))

    # Fuse W1 / Ws (and b1 / bs) along the output axis.
    wcat = jnp.concatenate(
        [pad2(w1, input_dim, out_p), pad2(ws, input_dim, out_p)], axis=1)
    bcat = jnp.concatenate([pad2(b1, 1, out_p), pad2(bs, 1, out_p)], axis=1)
    w2p, b2p = pad2(w2, out_p, out_p), pad2(b2, 1, out_p)
    w3p, b3p = pad2(w3, out_p, out_p), pad2(b3, 1, out_p)

    # Batch tiling: big tiles, aligned to the sublane packing of the dtype.
    sub = 8 if jnp.dtype(x.dtype).itemsize >= 4 else 16
    bm = min(block_m, _round_up(B, sub))
    b_pad = _round_up(B, bm)
    xp = jnp.pad(x, ((0, b_pad - B), (0, 0)))
    grid = (b_pad // bm,)

    # VMEM budget derived from the actual tiles (default pipelining
    # double-buffers every operand, weights included).
    w_item = jnp.dtype(wcat.dtype).itemsize
    wbytes = (wcat.size + w2p.size + w3p.size) * w_item
    bbytes = (bcat.size + b2p.size + b3p.size) * 4
    xbytes = bm * input_dim * jnp.dtype(xp.dtype).itemsize
    obytes = bm * out_p * jnp.dtype(orig_dtype).itemsize
    needed = 2 * (wbytes + bbytes + xbytes + obytes) + 4 * bm * 2 * out_p * 4
    vmem_limit = int(min(64 * 2**20, max(16 * 2**20, 2 * needed)))

    # Roofline hint for XLA's scheduler.
    flops = (2 * b_pad * input_dim * (2 * out_p)      # fused layer-1 + shortcut
             + 2 * 2 * b_pad * out_p * out_p          # layers 2 and 3
             + 6 * b_pad * out_p)                     # bias / relu / residual
    bytes_accessed = (xp.size * jnp.dtype(xp.dtype).itemsize
                      + wbytes + bbytes
                      + b_pad * out_p * jnp.dtype(orig_dtype).itemsize)
    cost = pl.CostEstimate(flops=int(flops), transcendentals=0,
                           bytes_accessed=int(bytes_accessed))

    # Weight/bias blocks are the full (padded) arrays, replicated across the
    # batch grid (their block index never changes).
    full = lambda shape: pl.BlockSpec(shape, lambda i: (0, 0))

    out = pl.pallas_call(
        functools.partial(_ff_kernel, out_p=out_p),
        out_shape=jax.ShapeDtypeStruct((b_pad, out_p), orig_dtype),
        grid_spec=pltpu.PrefetchScalarGridSpec(
            num_scalar_prefetch=0,
            grid=grid,
            in_specs=[
                pl.BlockSpec((bm, input_dim), lambda i: (i, 0)),   # x tile
                full((input_dim, 2 * out_p)), full((1, 2 * out_p)),  # Wcat, bcat
                full((out_p, out_p)), full((1, out_p)),              # W2, b2
                full((out_p, out_p)), full((1, out_p)),              # W3, b3
            ],
            out_specs=pl.BlockSpec((bm, out_p), lambda i: (i, 0)),
        ),
        compiler_params=pltpu.CompilerParams(
            dimension_semantics=("parallel",),
            vmem_limit_bytes=vmem_limit),
        cost_estimate=cost,
    )(xp, wcat, bcat, w2p, b2p, w3p, b3p)

    return out[:B, :out_dim]


def xavier_uniform(key, fan_in, fan_out, dtype=jnp.float32):
    # Same distribution as torch.nn.init.xavier_uniform_ (weights stored as
    # [in, out]; the distribution is symmetric in fan_in/fan_out).
    bound = (6.0 / (fan_in + fan_out)) ** 0.5
    return jax.random.uniform(key, (fan_in, fan_out), dtype, -bound, bound)


def init_ff_params(key, input_dim, out_dim, dtype=jnp.float32):
    k1, k2, k3, k4 = jax.random.split(key, 4)
    zeros = jnp.zeros((1, out_dim), dtype)
    w1 = xavier_uniform(k1, input_dim, out_dim, dtype)
    w2 = xavier_uniform(k2, out_dim, out_dim, dtype)
    w3 = xavier_uniform(k3, out_dim, out_dim, dtype)
    ws = xavier_uniform(k4, input_dim, out_dim, dtype)
    return (w1, zeros, w2, zeros, w3, zeros, ws, zeros)


def ff_reference(x, params):
    """Pure-JAX reference for correctness checking."""
    w1, b1, w2, b2, w3, b3, ws, bs = params
    h = jax.nn.relu(x @ w1 + b1)
    h = jax.nn.relu(h @ w2 + b2)
    h = jax.nn.relu(h @ w3 + b3)
    return h + (x @ ws + bs)


if __name__ == "__main__":
    key = jax.random.PRNGKey(0)
    kx, kp = jax.random.split(key)

    batch, input_dim, out_dim = 64, 32, 32
    x = jax.random.normal(kx, (batch, input_dim), jnp.float32)
    params = init_ff_params(kp, input_dim, out_dim)

    ref = ff_reference(x, params)

    # f32 path.
    out = jax.block_until_ready(ff_forward(x, params))
    assert out.shape == (batch, out_dim)
    assert jnp.allclose(out, ref, atol=2e-5, rtol=2e-5), "f32 mismatch vs reference"

    # bf16 MXU path with f32 accumulation (looser tolerance by construction).
    out_bf16 = jax.block_until_ready(
        ff_forward(x, params, compute_dtype=jnp.bfloat16))
    assert out_bf16.shape == (batch, out_dim)
    assert jnp.allclose(out_bf16, ref, atol=1e-1, rtol=1e-1), "bf16 mismatch vs reference"

    print("KERNEL_OK")
</pallas_src>

<mosaic_0001>
module attributes {stable_mosaic.version = 11 : i64} {
  func.func @_ff_kernel(%arg0: i32, %arg1: memref<64x32xf32, #tpu.memory_space<vmem>>, %arg2: memref<32x256xf32, #tpu.memory_space<vmem>>, %arg3: memref<1x256xf32, #tpu.memory_space<vmem>>, %arg4: memref<128x128xf32, #tpu.memory_space<vmem>>, %arg5: memref<1x128xf32, #tpu.memory_space<vmem>>, %arg6: memref<128x128xf32, #tpu.memory_space<vmem>>, %arg7: memref<1x128xf32, #tpu.memory_space<vmem>>, %arg8: memref<64x128xf32, #tpu.memory_space<vmem>>) attributes {dimension_semantics = [#tpu.dimension_semantics<parallel>], iteration_bounds = array<i64: 1>, scalar_prefetch = 0 : i64, scratch_operands = 0 : i64, tpu.core_type = #tpu.core_type<tc>, window_params = [{transform_indices = @transform_0, window_bounds = array<i64: 64, 32>}, {pipeline_mode = #tpu.pipeline_mode<synchronous>, transform_indices = @transform_1, window_bounds = array<i64: 32, 256>}, {pipeline_mode = #tpu.pipeline_mode<synchronous>, transform_indices = @transform_2, window_bounds = array<i64: 1, 256>}, {pipeline_mode = #tpu.pipeline_mode<synchronous>, transform_indices = @transform_3, window_bounds = array<i64: 128, 128>}, {pipeline_mode = #tpu.pipeline_mode<synchronous>, transform_indices = @transform_4, window_bounds = array<i64: 1, 128>}, {pipeline_mode = #tpu.pipeline_mode<synchronous>, transform_indices = @transform_5, window_bounds = array<i64: 128, 128>}, {pipeline_mode = #tpu.pipeline_mode<synchronous>, transform_indices = @transform_6, window_bounds = array<i64: 1, 128>}, {transform_indices = @transform_7, window_bounds = array<i64: 64, 128>}]} {
    %c0 = arith.constant 0 : index
    %c0_0 = arith.constant 0 : index
    %0 = vector.load %arg1[%c0, %c0_0] : memref<64x32xf32, #tpu.memory_space<vmem>>, vector<64x32xf32>
    %c0_1 = arith.constant 0 : index
    %c0_2 = arith.constant 0 : index
    %1 = vector.load %arg2[%c0_1, %c0_2] : memref<32x256xf32, #tpu.memory_space<vmem>>, vector<32x256xf32>
    %cst = arith.constant dense<0.000000e+00> : vector<64x256xf32>
    %2 = tpu.matmul %0, %1, %cst {dimension_numbers = #tpu.dot_dimension_numbers<[1], [0], [0], [1], [0, 0, 1, 1], [], []>} : vector<64x32xf32>, vector<32x256xf32>, vector<64x256xf32> -> vector<64x256xf32>
    %c0_3 = arith.constant 0 : index
    %c0_4 = arith.constant 0 : index
    %3 = vector.load %arg3[%c0_3, %c0_4] : memref<1x256xf32, #tpu.memory_space<vmem>>, vector<1x256xf32>
    %4 = vector.broadcast %3 : vector<1x256xf32> to vector<64x256xf32>
    %5 = arith.addf %2, %4 : vector<64x256xf32>
    %6 = vector.extract_strided_slice %5 {offsets = [0, 0], sizes = [64, 128], strides = [1, 1]} : vector<64x256xf32> to vector<64x128xf32>
    %cst_5 = arith.constant 0.000000e+00 : f32
    %7 = vector.broadcast %cst_5 : f32 to vector<64x128xf32>
    %8 = arith.maximumf %6, %7 : vector<64x128xf32>
    %9 = vector.extract_strided_slice %5 {offsets = [0, 128], sizes = [64, 128], strides = [1, 1]} : vector<64x256xf32> to vector<64x128xf32>
    %c0_6 = arith.constant 0 : index
    %c0_7 = arith.constant 0 : index
    %10 = vector.load %arg4[%c0_6, %c0_7] : memref<128x128xf32, #tpu.memory_space<vmem>>, vector<128x128xf32>
    %cst_8 = arith.constant dense<0.000000e+00> : vector<64x128xf32>
    %11 = tpu.matmul %8, %10, %cst_8 {dimension_numbers = #tpu.dot_dimension_numbers<[1], [0], [0], [1], [0, 0, 1, 1], [], []>} : vector<64x128xf32>, vector<128x128xf32>, vector<64x128xf32> -> vector<64x128xf32>
    %c0_9 = arith.constant 0 : index
    %c0_10 = arith.constant 0 : index
    %12 = vector.load %arg5[%c0_9, %c0_10] : memref<1x128xf32, #tpu.memory_space<vmem>>, vector<1x128xf32>
    %13 = vector.broadcast %12 : vector<1x128xf32> to vector<64x128xf32>
    %14 = arith.addf %11, %13 : vector<64x128xf32>
    %cst_11 = arith.constant 0.000000e+00 : f32
    %15 = vector.broadcast %cst_11 : f32 to vector<64x128xf32>
    %16 = arith.maximumf %14, %15 : vector<64x128xf32>
    %c0_12 = arith.constant 0 : index
    %c0_13 = arith.constant 0 : index
    %17 = vector.load %arg6[%c0_12, %c0_13] : memref<128x128xf32, #tpu.memory_space<vmem>>, vector<128x128xf32>
    %cst_14 = arith.constant dense<0.000000e+00> : vector<64x128xf32>
    %18 = tpu.matmul %16, %17, %cst_14 {dimension_numbers = #tpu.dot_dimension_numbers<[1], [0], [0], [1], [0, 0, 1, 1], [], []>} : vector<64x128xf32>, vector<128x128xf32>, vector<64x128xf32> -> vector<64x128xf32>
    %c0_15 = arith.constant 0 : index
    %c0_16 = arith.constant 0 : index
    %19 = vector.load %arg7[%c0_15, %c0_16] : memref<1x128xf32, #tpu.memory_space<vmem>>, vector<1x128xf32>
    %20 = vector.broadcast %19 : vector<1x128xf32> to vector<64x128xf32>
    %21 = arith.addf %18, %20 : vector<64x128xf32>
    %cst_17 = arith.constant 0.000000e+00 : f32
    %22 = vector.broadcast %cst_17 : f32 to vector<64x128xf32>
    %23 = arith.maximumf %21, %22 : vector<64x128xf32>
    %24 = arith.addf %23, %9 : vector<64x128xf32>
    %c0_18 = arith.constant 0 : index
    %c0_19 = arith.constant 0 : index
    %25 = vector.load %arg8[%c0_18, %c0_19] : memref<64x128xf32, #tpu.memory_space<vmem>>, vector<64x128xf32>
    tpu.vector_store %arg8[%c0_18, %c0_19], %24 {strides = array<i32>} : memref<64x128xf32, #tpu.memory_space<vmem>>, vector<64x128xf32>,
    return
  }
  func.func @transform_0(%arg0: i32) -> (i32, i32) {
    %c0_i32 = arith.constant 0 : i32
    %c0_i32_0 = arith.constant 0 : i32
    return %arg0, %c0_i32 : i32, i32
  }
  func.func @transform_1(%arg0: i32) -> (i32, i32) {
    %c0_i32 = arith.constant 0 : i32
    %c0_i32_0 = arith.constant 0 : i32
    %c0_i32_1 = arith.constant 0 : i32
    return %c0_i32, %c0_i32_0 : i32, i32
  }
  func.func @transform_2(%arg0: i32) -> (i32, i32) {
    %c0_i32 = arith.constant 0 : i32
    %c0_i32_0 = arith.constant 0 : i32
    %c0_i32_1 = arith.constant 0 : i32
    return %c0_i32, %c0_i32_0 : i32, i32
  }
  func.func @transform_3(%arg0: i32) -> (i32, i32) {
    %c0_i32 = arith.constant 0 : i32
    %c0_i32_0 = arith.constant 0 : i32
    %c0_i32_1 = arith.constant 0 : i32
    return %c0_i32, %c0_i32_0 : i32, i32
  }
  func.func @transform_4(%arg0: i32) -> (i32, i32) {
    %c0_i32 = arith.constant 0 : i32
    %c0_i32_0 = arith.constant 0 : i32
    %c0_i32_1 = arith.constant 0 : i32
    return %c0_i32, %c0_i32_0 : i32, i32
  }
  func.func @transform_5(%arg0: i32) -> (i32, i32) {
    %c0_i32 = arith.constant 0 : i32
    %c0_i32_0 = arith.constant 0 : i32
    %c0_i32_1 = arith.constant 0 : i32
    return %c0_i32, %c0_i32_0 : i32, i32
  }
  func.func @transform_6(%arg0: i32) -> (i32, i32) {
    %c0_i32 = arith.constant 0 : i32
    %c0_i32_0 = arith.constant 0 : i32
    %c0_i32_1 = arith.constant 0 : i32
    return %c0_i32, %c0_i32_0 : i32, i32
  }
  func.func @transform_7(%arg0: i32) -> (i32, i32) {
    %c0_i32 = arith.constant 0 : i32
    %c0_i32_0 = arith.constant 0 : i32
    return %arg0, %c0_i32 : i32, i32
  }
}

</mosaic_0001>

<bundles_post_ra>
// kernel: ff_forward.1
= control target key start
LH: loop header
LB: loop body
LE: loop exit
PB: predicated region body
PF: predicated region fallthrough
CT: control target
= control target key end

     0   :  { %vm48_vm0 = vcmask 261120   ;;  %s650_s1 = inlined_call_operand.vmem [shape: f32[32,256], index: 1, kind: input, shape index: {}]   ;;  %s651_s0 = inlined_call_operand.vmem [shape: f32[64,32], index: 0, kind: input, shape index: {}]   ;;  %s652_s3 = inlined_call_operand.vmem [shape: f32[128,128], index: 3, kind: input, shape index: {}]   ;;  %s653_s4 = inlined_call_operand.vmem [shape: f32[1,128], index: 4, kind: input, shape index: {}]   ;;  %s654_s2 = inlined_call_operand.vmem [shape: f32[1,256], index: 2, kind: input, shape index: {}]   ;;  %s655_s5 = inlined_call_operand.vmem [shape: f32[128,128], index: 5, kind: input, shape index: {}]   ;;  %s656_s6 = inlined_call_operand.vmem [shape: f32[1,128], index: 6, kind: input, shape index: {}]   ;;  %s657_s7 = inlined_call_operand.vmem [shape: f32[64,128], index: 7, kind: output, shape index: {}]  }
   0x1   :  { %v40_v0 = vld [vmem:[%s650_s1 + $0x30] sm:$0xff]  ;;  %v38_v1 = vld [vmem:[%s650_s1 + $0x20] sm:$0xff]  ;;  %v433_v5 = vld [vmem:[%s651_s0 + $0x8] sm:$0xff] }
   0x2   :  { %85 = vmatpush.msra.mxu0 %v40_v0  ;;  %v36_v2 = vld [vmem:[%s650_s1 + $0x10] sm:$0xff]  ;;  %v34_v3 = vld [vmem:[%s650_s1] sm:$0xff]  ;;  %v447_v7 = vld [vmem:[%s651_s0 + $0x18] sm:$0xff] }
   0x3   :  { %v426_v4 = vld [vmem:[%s651_s0] sm:$0xff]  ;;  %v440_v6 = vld [vmem:[%s651_s0 + $0x10] sm:$0xff]  ;;  %v178_v8 = vld [vmem:[%s652_s3 + $0x78] sm:$0xff] }
   0x4   :  { %86 = vmatpush.msra.mxu0 %v38_v1  ;;  %v177_v9 = vld [vmem:[%s652_s3 + $0x70] sm:$0xff]  ;;  %337 = vmatpush.msra.mxu2 %v178_v8  ;;  %v176_v10 = vld [vmem:[%s652_s3 + $0x68] sm:$0xff]  ;;  %v175_v11 = vld [vmem:[%s652_s3 + $0x60] sm:$0xff] }
   0x5   :  { %v466_v12 = vld [vmem:[%s651_s0 + $0x20] sm:$0xff]  ;;  %v174_v13 = vld [vmem:[%s652_s3 + $0x58] sm:$0xff]  ;;  %v173_v14 = vld [vmem:[%s652_s3 + $0x50] sm:$0xff] }
   0x6   :  { %87 = vmatpush.msra.mxu0 %v36_v2  ;;  %338 = vmatpush.msra.mxu2 %v177_v9  ;;  %v172_v15 = vld [vmem:[%s652_s3 + $0x48] sm:$0xff]  ;;  %v171_v16 = vld [vmem:[%s652_s3 + $0x40] sm:$0xff]  ;;  %v170_v18 = vld [vmem:[%s652_s3 + $0x38] sm:$0xff] }
   0x7   :  { %v485_v17 = vld [vmem:[%s651_s0 + $0x28] sm:$0xff]  ;;  %v169_v19 = vld [vmem:[%s652_s3 + $0x30] sm:$0xff]  ;;  %v167_v21 = vld [vmem:[%s652_s3 + $0x20] sm:$0xff] }
   0x8   :  { %88 = vmatpush.msra.mxu0 %v34_v3  ;;  %339 = vmatpush.msra.mxu2 %v176_v10  ;;  %v168_v20 = vld [vmem:[%s652_s3 + $0x28] sm:$0xff]  ;;  %v504_v22 = vld [vmem:[%s651_s0 + $0x30] sm:$0xff]  ;;  %v166_v23 = vld [vmem:[%s652_s3 + $0x18] sm:$0xff] }
   0x9   :  { %321 = vmatmul.msk.f32.vlgmr.msra.gmra.mxu0 %vm48_vm0, %v426_v4  ;;  %v514_v24 = vld [vmem:[%s651_s0 + $0x38] sm:$0xff]  ;;  %v165_v25 = vld [vmem:[%s652_s3 + $0x10] sm:$0xff]  ;;  %v164_v26 = vld [vmem:[%s652_s3 + $0x8] sm:$0xff] }
   0xa   :  { %183 = vmatpush.msrb.mxu0 %v178_v8  ;;  %340 = vmatpush.msra.mxu2 %v175_v11  ;;  %v163_v27 = vld [vmem:[%s652_s3] sm:$0xff]  ;;  %v41_v42 = vld [vmem:[%s650_s1 + $0x38] sm:$0xff]  ;;  %v39_v43 = vld [vmem:[%s650_s1 + $0x28] sm:$0xff] }
   0xb   :  { %v530_v28 = vld [vmem:[%s654_s2] sm:$0x3]  ;;  %126 = vmatpush.msra.mxu1 %v41_v42  ;;  %v37_v44 = vld [vmem:[%s650_s1 + $0x18] sm:$0xff]  ;;  %v35_v47 = vld [vmem:[%s650_s1 + $0x8] sm:$0xff] }
   0xc   :  { %184 = vmatpush.msrb.mxu0 %v177_v9  ;;  %341 = vmatpush.msra.mxu2 %v174_v13  ;;  %v533_v29 = vperm.slane %v530_v28, 0  ;;  %v247_v49 = vld [vmem:[%s655_s5 + $0x78] sm:$0xff]  ;;  %v246_v50 = vld [vmem:[%s655_s5 + $0x70] sm:$0xff]  ;;  %v245_v51 = vld [vmem:[%s655_s5 + $0x68] sm:$0xff] }
   0xd   :  { %127 = vmatpush.msra.mxu1 %v39_v43  ;;  %353 = vmatpush.msra.mxu3 %v247_v49  ;;  %v244_v54 = vld [vmem:[%s655_s5 + $0x60] sm:$0xff]  ;;  %v243_v56 = vld [vmem:[%s655_s5 + $0x58] sm:$0xff]  ;;  %v242_v57 = vld [vmem:[%s655_s5 + $0x50] sm:$0xff]  ;;  %v45_v43 = vperm.slane %v530_v28, 1 }
   0xe   :  { %185 = vmatpush.msrb.mxu0 %v176_v10  ;;  %342 = vmatpush.msra.mxu2 %v173_v14  ;;  %v241_v58 = vld [vmem:[%s655_s5 + $0x48] sm:$0xff]  ;;  %v240_v61 = vld [vmem:[%s655_s5 + $0x40] sm:$0xff]  ;;  %v239_v63 = vld [vmem:[%s655_s5 + $0x38] sm:$0xff] }
   0xf   :  { %128 = vmatpush.msra.mxu1 %v37_v44  ;;  %354 = vmatpush.msra.mxu3 %v246_v50  ;;  %v238_v0 = vld [vmem:[%s655_s5 + $0x30] sm:$0xff]  ;;  %v237_v1 = vld [vmem:[%s655_s5 + $0x28] sm:$0xff]  ;;  %v232_v9 = vld [vmem:[%s655_s5] sm:$0xff] }
  0x10   :  { %186 = vmatpush.msrb.mxu0 %v175_v11  ;;  %343 = vmatpush.msra.mxu2 %v172_v15  ;;  %v233_v8 = vld [vmem:[%s655_s5 + $0x8] sm:$0xff]  ;;  %v369_v10 = vld [vmem:[%s653_s4] ss:$0 sm:$0xff] }
  0x11   :  { %322 = vmatmul.msk.f32.gmra.mxu0 %vm48_vm0, %v433_v5  ;;  %129 = vmatpush.msra.mxu1 %v35_v47 }
  0x12   :  { %187 = vmatpush.msrb.mxu0 %v174_v13  ;;  %344 = vmatpush.msra.mxu2 %v171_v16 }
  0x13   :  { %329 = vmatmul.msk.f32.vlgmr.msra.gmra.mxu1 %vm48_vm0, %v426_v4  ;;  %355 = vmatpush.msra.mxu3 %v245_v51  ;;  %v236_v4 = vld [vmem:[%s655_s5 + $0x20] sm:$0xff] }
  0x14   :  { %188 = vmatpush.msrb.mxu0 %v173_v14  ;;  %345 = vmatpush.msra.mxu2 %v170_v18 }
  0x15   :  { %252 = vmatpush.msrb.mxu1 %v247_v49  ;;  %356 = vmatpush.msra.mxu3 %v244_v54 }
  0x16   :  { %189 = vmatpush.msrb.mxu0 %v172_v15  ;;  %346 = vmatpush.msra.mxu2 %v169_v19 }
  0x17   :  { %253 = vmatpush.msrb.mxu1 %v246_v50  ;;  %357 = vmatpush.msra.mxu3 %v243_v56 }
  0x18   :  { %190 = vmatpush.msrb.mxu0 %v171_v16  ;;  %347 = vmatpush.msra.mxu2 %v168_v20 }
  0x19   :  { %323 = vmatmul.msk.f32.gmra.mxu0 %vm48_vm0, %v440_v6  ;;  %254 = vmatpush.msrb.mxu1 %v245_v51 }
  0x1a   :  { %191 = vmatpush.msrb.mxu0 %v170_v18  ;;  %348 = vmatpush.msra.mxu2 %v167_v21 }
  0x1b   :  { %255 = vmatpush.msrb.mxu1 %v244_v54  ;;  %358 = vmatpush.msra.mxu3 %v242_v57 }
  0x1c   :  { %192 = vmatpush.msrb.mxu0 %v169_v19  ;;  %349 = vmatpush.msra.mxu2 %v166_v23 }
  0x1d   :  { %330 = vmatmul.msk.f32.gmra.mxu1 %vm48_vm0, %v433_v5  ;;  %359 = vmatpush.msra.mxu3 %v241_v58 }
  0x1e   :  { %193 = vmatpush.msrb.mxu0 %v168_v20  ;;  %350 = vmatpush.msra.mxu2 %v165_v25 }
  0x1f   :  { %256 = vmatpush.msrb.mxu1 %v243_v56  ;;  %360 = vmatpush.msra.mxu3 %v240_v61 }
  0x20   :  { %194 = vmatpush.msrb.mxu0 %v167_v21  ;;  %351 = vmatpush.msra.mxu2 %v164_v26 }
  0x21   :  { %324 = vmatmul.msk.f32.gmra.mxu0 %vm48_vm0, %v447_v7  ;;  %257 = vmatpush.msrb.mxu1 %v242_v57 }
  0x22   :  { %195 = vmatpush.msrb.mxu0 %v166_v23  ;;  %352 = vmatpush.msra.mxu2 %v163_v27 }
  0x23   :  { %258 = vmatpush.msrb.mxu1 %v241_v58  ;;  %361 = vmatpush.msra.mxu3 %v239_v63 }
  0x24   :  { %196 = vmatpush.msrb.mxu0 %v165_v25 }
  0x25   :  { %259 = vmatpush.msrb.mxu1 %v240_v61  ;;  %362 = vmatpush.msra.mxu3 %v238_v0 }
  0x26   :  { %197 = vmatpush.msrb.mxu0 %v164_v26  ;;  %331 = vmatmul.msk.f32.gmra.mxu1 %vm48_vm0, %v440_v6  ;;  %v235_v6 = vld [vmem:[%s655_s5 + $0x18] sm:$0xff] }
  0x27   :  { %260 = vmatpush.msrb.mxu1 %v239_v63  ;;  %363 = vmatpush.msra.mxu3 %v237_v1 }
  0x28   :  { %198 = vmatpush.msrb.mxu0 %v163_v27 }
  0x29   :  { %325 = vmatmul.msk.f32.gmra.mxu0 %vm48_vm0, %v466_v12  ;;  %261 = vmatpush.msrb.mxu1 %v238_v0 }
  0x2a   :  { %364 = vmatpush.msra.mxu3 %v236_v4 }
  0x2b   :  { %262 = vmatpush.msrb.mxu1 %v237_v1 }
  0x2c   :  { %365 = vmatpush.msra.mxu3 %v235_v6 }
  0x2d   :  { %263 = vmatpush.msrb.mxu1 %v236_v4 }
  0x2e   :  { %332 = vmatmul.msk.f32.gmra.mxu1 %vm48_vm0, %v447_v7  ;;  %v234_v7 = vld [vmem:[%s655_s5 + $0x10] sm:$0xff] }
  0x2f   :  { %264 = vmatpush.msrb.mxu1 %v235_v6  ;;  %366 = vmatpush.msra.mxu3 %v234_v7 }
  0x31   :  { %326 = vmatmul.msk.f32.gmra.mxu0 %vm48_vm0, %v485_v17  ;;  %265 = vmatpush.msrb.mxu1 %v234_v7 }
  0x32   :  { %367 = vmatpush.msra.mxu3 %v233_v8 }
  0x33   :  { %266 = vmatpush.msrb.mxu1 %v233_v8 }
  0x34   :  { %368 = vmatpush.msra.mxu3 %v232_v9 }
  0x35   :  { %267 = vmatpush.msrb.mxu1 %v232_v9 }
  0x36   :  { %333 = vmatmul.msk.f32.gmra.mxu1 %vm48_vm0, %v466_v12 }
  0x39   :  { %327 = vmatmul.msk.f32.gmra.mxu0 %vm48_vm0, %v504_v22 }
  0x3e   :  { %334 = vmatmul.msk.f32.gmra.mxu1 %vm48_vm0, %v485_v17 }
  0x41   :  { %328 = vmatmul.msk.f32.gmra.mxu0 %vm48_vm0, %v514_v24 }
  0x46   :  { %335 = vmatmul.msk.f32.gmra.mxu1 %vm48_vm0, %v504_v22 }
  0x4e   :  { %336 = vmatmul.msk.f32.gmra.mxu1 %vm48_vm0, %v514_v24 }
  0x86   :  { %v90_v30 = vpop.f32.mrf.mxu0 }
  0x87   :  { %v91_v31 = vadd.f32 %v90_v30, %v533_v29 }
  0x89   :  { %v155_v32 = vmax.f32 %v91_v31, 0.0 }
  0x8b   :  { %199 = vmatmul.f32.vlgmr.msrb.gmra.mxu0 %v155_v32 }
  0x8e   :  { %v93_v33 = vpop.f32.mrf.mxu0 }
  0x8f   :  { %v94_v34 = vadd.f32 %v93_v33, %v533_v29 }
  0x90   :  { %v131_v23 = vpop.f32.mrf.mxu1 }
  0x91   :  { %v156_v35 = vmax.f32 %v94_v34, 0.0 }
  0x93   :  { %202 = vmatmul.f32.vlgmr.msra.gmra.mxu2 %v156_v35 }
  0x96   :  { %v96_v36 = vpop.f32.mrf.mxu0 }
  0x97   :  { %v97_v37 = vadd.f32 %v96_v36, %v533_v29 }
  0x99   :  { %v157_v38 = vmax.f32 %v97_v37, 0.0 }
  0x9a   :  { %v134_v27 = vpop.f32.mrf.mxu1 }
  0x9b   :  { %205 = vmatmul.f32.gmra.mxu2 %v157_v38  ;;  %v135_v54 = vadd.f32 %v134_v27, %v45_v43 }
  0x9e   :  { %v99_v39 = vpop.f32.mrf.mxu0 }
  0x9f   :  { %v100_v40 = vadd.f32 %v99_v39, %v533_v29 }
  0xa1   :  { %v158_v41 = vmax.f32 %v100_v40, 0.0 }
  0xa3   :  { %208 = vmatmul.f32.gmra.mxu2 %v158_v41  ;;  %v137_v32 = vpop.f32.mrf.mxu1 }
  0xa4   :  { %v138_v58 = vadd.f32 %v137_v32, %v45_v43 }
  0xa6   :  { %v102_v45 = vpop.f32.mrf.mxu0 }
  0xa7   :  { %v103_v46 = vadd.f32 %v102_v45, %v533_v29 }
  0xa9   :  { %v159_v48 = vmax.f32 %v103_v46, 0.0  ;;  %v370_v46 = vld [vmem:[%s656_s6] ss:$0 sm:$0xff] }
  0xab   :  { %211 = vmatmul.f32.gmra.mxu2 %v159_v48  ;;  %v140_v36 = vpop.f32.mrf.mxu1  ;;  %v132_v48 = vadd.f32 %v131_v23, %v45_v43 }
  0xac   :  { %v141_v63 = vadd.f32 %v140_v36, %v45_v43 }
  0xae   :  { %v105_v52 = vpop.f32.mrf.mxu0 }
  0xaf   :  { %v106_v53 = vadd.f32 %v105_v52, %v533_v29 }
  0xb1   :  { %v160_v55 = vmax.f32 %v106_v53, 0.0 }
  0xb3   :  { %214 = vmatmul.f32.gmra.mxu2 %v160_v55  ;;  %v143_v40 = vpop.f32.mrf.mxu1 }
  0xb4   :  { %v144_v4 = vadd.f32 %v143_v40, %v45_v43 }
  0xb6   :  { %v108_v59 = vpop.f32.mrf.mxu0 }
  0xb7   :  { %v109_v60 = vadd.f32 %v108_v59, %v533_v29 }
  0xb9   :  { %v161_v62 = vmax.f32 %v109_v60, 0.0 }
  0xbb   :  { %217 = vmatmul.f32.gmra.mxu2 %v161_v62  ;;  %v146_v41 = vpop.f32.mrf.mxu1 }
  0xbc   :  { %v147_v9 = vadd.f32 %v146_v41, %v45_v43 }
  0xbe   :  { %v111_v2 = vpop.f32.mrf.mxu0 }
  0xbf   :  { %v112_v3 = vadd.f32 %v111_v2, %v533_v29 }
  0xc1   :  { %v162_v5 = vmax.f32 %v112_v3, 0.0 }
  0xc3   :  { %220 = vmatmul.f32.gmra.mxu2 %v162_v5  ;;  %v149_v42 = vpop.f32.mrf.mxu1 }
  0xcb   :  { %v152_v44 = vpop.f32.mrf.mxu1 }
  0xcc   :  { %v153_v45 = vadd.f32 %v152_v44, %v45_v43 }
 0x108   :  { %v200_v11 = vpop.f32.mrf.mxu0 }
 0x109   :  { %v201_v12 = vadd.f32 %v369_v10, %v200_v11 }
 0x10b   :  { %v224_v13 = vmax.f32 %v201_v12, 0.0 }
 0x10d   :  { %268 = vmatmul.f32.vlgmr.msrb.gmra.mxu1 %v224_v13 }
 0x116   :  { %v203_v14 = vpop.f32.mrf.mxu2 }
 0x117   :  { %v204_v15 = vadd.f32 %v369_v10, %v203_v14  ;;  %v150_v14 = vadd.f32 %v149_v42, %v45_v43 }
 0x119   :  { %v225_v16 = vmax.f32 %v204_v15, 0.0 }
 0x11b   :  { %271 = vmatmul.f32.vlgmr.msra.gmra.mxu3 %v225_v16 }
 0x11e   :  { %v206_v17 = vpop.f32.mrf.mxu2 }
 0x11f   :  { %v207_v18 = vadd.f32 %v369_v10, %v206_v17 }
 0x121   :  { %v226_v19 = vmax.f32 %v207_v18, 0.0 }
 0x123   :  { %274 = vmatmul.f32.gmra.mxu3 %v226_v19 }
 0x126   :  { %v209_v20 = vpop.f32.mrf.mxu2 }
 0x127   :  { %v210_v21 = vadd.f32 %v369_v10, %v209_v20 }
 0x129   :  { %v227_v22 = vmax.f32 %v210_v21, 0.0 }
 0x12b   :  { %277 = vmatmul.f32.gmra.mxu3 %v227_v22 }
 0x12e   :  { %v212_v24 = vpop.f32.mrf.mxu2 }
 0x12f   :  { %v213_v25 = vadd.f32 %v369_v10, %v212_v24 }
 0x131   :  { %v228_v26 = vmax.f32 %v213_v25, 0.0 }
 0x133   :  { %280 = vmatmul.f32.gmra.mxu3 %v228_v26 }
 0x136   :  { %v215_v29 = vpop.f32.mrf.mxu2 }
 0x137   :  { %v216_v30 = vadd.f32 %v369_v10, %v215_v29 }
 0x139   :  { %v229_v31 = vmax.f32 %v216_v30, 0.0 }
 0x13b   :  { %283 = vmatmul.f32.gmra.mxu3 %v229_v31 }
 0x13e   :  { %v218_v33 = vpop.f32.mrf.mxu2 }
 0x13f   :  { %v219_v34 = vadd.f32 %v369_v10, %v218_v33 }
 0x141   :  { %v230_v35 = vmax.f32 %v219_v34, 0.0 }
 0x143   :  { %286 = vmatmul.f32.gmra.mxu3 %v230_v35 }
 0x146   :  { %v221_v37 = vpop.f32.mrf.mxu2 }
 0x147   :  { %v222_v38 = vadd.f32 %v369_v10, %v221_v37 }
 0x149   :  { %v231_v39 = vmax.f32 %v222_v38, 0.0 }
 0x14b   :  { %289 = vmatmul.f32.gmra.mxu3 %v231_v39 }
 0x18a   :  { %v269_v47 = vpop.f32.mrf.mxu1 }
 0x18b   :  { %v270_v49 = vadd.f32 %v370_v46, %v269_v47 }
 0x18d   :  { %v293_v50 = vmax.f32 %v270_v49, 0.0 }
 0x18f   :  { %v301_v51 = vadd.f32 %v293_v50, %v132_v48 }
 0x191   :  { %309 = vst [vmem:[%s657_s7] sm:$0xff] %v301_v51 }
 0x19e   :  { %v272_v52 = vpop.f32.mrf.mxu3 }
 0x19f   :  { %v273_v53 = vadd.f32 %v370_v46, %v272_v52 }
 0x1a1   :  { %v294_v55 = vmax.f32 %v273_v53, 0.0 }
 0x1a3   :  { %v302_v28 = vadd.f32 %v294_v55, %v135_v54 }
 0x1a5   :  { %310 = vst [vmem:[%s657_s7 + $0x8] sm:$0xff] %v302_v28 }
 0x1a6   :  { %v275_v56 = vpop.f32.mrf.mxu3 }
 0x1a7   :  { %v276_v57 = vadd.f32 %v370_v46, %v275_v56 }
 0x1a9   :  { %v295_v59 = vmax.f32 %v276_v57, 0.0 }
 0x1ab   :  { %v303_v60 = vadd.f32 %v295_v59, %v138_v58 }
 0x1ad   :  { %311 = vst [vmem:[%s657_s7 + $0x10] sm:$0xff] %v303_v60 }
 0x1ae   :  { %v278_v61 = vpop.f32.mrf.mxu3 }
 0x1af   :  { %v279_v62 = vadd.f32 %v370_v46, %v278_v61 }
 0x1b1   :  { %v296_v0 = vmax.f32 %v279_v62, 0.0 }
 0x1b3   :  { %v304_v1 = vadd.f32 %v296_v0, %v141_v63 }
 0x1b5   :  { %312 = vst [vmem:[%s657_s7 + $0x18] sm:$0xff] %v304_v1 }
 0x1b6   :  { %v281_v2 = vpop.f32.mrf.mxu3 }
 0x1b7   :  { %v282_v3 = vadd.f32 %v370_v46, %v281_v2 }
 0x1b9   :  { %v297_v5 = vmax.f32 %v282_v3, 0.0 }
 0x1bb   :  { %v305_v6 = vadd.f32 %v297_v5, %v144_v4 }
 0x1bd   :  { %313 = vst [vmem:[%s657_s7 + $0x20] sm:$0xff] %v305_v6 }
 0x1be   :  { %v284_v7 = vpop.f32.mrf.mxu3 }
 0x1bf   :  { %v285_v8 = vadd.f32 %v370_v46, %v284_v7 }
 0x1c1   :  { %v298_v10 = vmax.f32 %v285_v8, 0.0 }
 0x1c3   :  { %v306_v11 = vadd.f32 %v298_v10, %v147_v9 }
 0x1c5   :  { %314 = vst [vmem:[%s657_s7 + $0x28] sm:$0xff] %v306_v11 }
 0x1c6   :  { %v287_v12 = vpop.f32.mrf.mxu3 }
 0x1c7   :  { %v288_v13 = vadd.f32 %v370_v46, %v287_v12 }
 0x1c9   :  { %v299_v15 = vmax.f32 %v288_v13, 0.0 }
 0x1cb   :  { %v307_v16 = vadd.f32 %v299_v15, %v150_v14 }
 0x1cd   :  { %315 = vst [vmem:[%s657_s7 + $0x30] sm:$0xff] %v307_v16 }
 0x1ce   :  { %v290_v17 = vpop.f32.mrf.mxu3 }
 0x1cf   :  { %v291_v18 = vadd.f32 %v370_v46, %v290_v17 }
 0x1d1   :  { %v300_v19 = vmax.f32 %v291_v18, 0.0 }
 0x1d3   :  { %v308_v20 = vadd.f32 %v300_v19, %v153_v45 }
 0x1d5   :  { %316 = vst [vmem:[%s657_s7 + $0x38] sm:$0xff] %v308_v20 }

</bundles_post_ra>
